<compile_context>
chip_gen: v7x
topology: tpu7x:2x2x1
jax: 0.10.0
libtpu: 0.0.40
codegen_flags: <defaults>
</compile_context>

<pallas_src>
import functools

import jax
import jax.numpy as jnp
from jax import lax
from jax.experimental import pallas as pl
from jax.experimental.pallas import tpu as pltpu

KSIZE = 21  # first conv kernel size (from the module definition)


def _round_up(x, m):
    return ((x + m - 1) // m) * m


def _residual_unit_kernel(xmain_ref, xhalo_ref, w1_ref, b1_ref, w2_ref, b2_ref,
                          o_ref, win_ref, *, halo, pad, dilation):
    # Block shapes per grid step (b, j):
    #   xmain_ref: (1, C, T)        padded-input lanes [j*T, (j+1)*T)              f32
    #   xhalo_ref: (1, C, 2*halo)   padded-input lanes [(j+1)*T, (j+1)*T + 2*halo) f32
    #   w1_ref   : (K, C, C)        conv1 weights, w1_ref[k] = (C_out, C_in)       f32
    #   b1_ref   : (C, 1)
    #   w2_ref   : (C, C)           1x1 conv weights (C_out, C_in)
    #   b2_ref   : (C, 1)
    #   o_ref    : (1, C, T)
    #   win_ref  : (C, T + 2*halo)  VMEM scratch: assembled padded window
    C = xmain_ref.shape[1]
    T = xmain_ref.shape[2]
    K = w1_ref.shape[0]

    # Assemble the padded window with two lane-aligned copies (no concatenate temp).
    win_ref[:, :T] = xmain_ref[0]
    win_ref[:, T:] = xhalo_ref[0]

    # conv1 (k=21, dilated): accumulate 21 lane-shifted taps through (C,C)@(C,T) matmuls.
    # L stays on the lane axis, so every operand/store is lane-dense.
    base = halo - pad
    acc = jnp.broadcast_to(b1_ref[...], (C, T))          # hoisted bias broadcast
    for k in range(K):
        s = base + k * dilation
        acc = acc + jnp.dot(w1_ref[k], win_ref[:, s:s + T],
                            preferred_element_type=jnp.float32)

    # ELU(alpha=1).  minimum() keeps the dead branch finite (forward-identical).
    h = jnp.where(acc > 0, acc, jnp.exp(jnp.minimum(acc, 0.0)) - 1.0)

    # 1x1 conv == plain channel matmul, still lane-dense over T.
    y = jnp.dot(w2_ref[...], h, preferred_element_type=jnp.float32) \
        + jnp.broadcast_to(b2_ref[...], (C, T))

    # Residual: the interior of the window is exactly the original input (exact f32).
    o_ref[0] = (win_ref[:, halo:halo + T] + y).astype(o_ref.dtype)


def residual_unit(x_ncl, w1, b1, w2, b2, dilation=1, tile_l=1024):
    """x_ncl: (B, C, L). w1: (C, C, 21), b1: (C,), w2: (C, C, 1), b2: (C,). Returns (B, C, L)."""
    B, C, L = x_ncl.shape
    pad = dilation * (KSIZE - 1) // 2   # 'same' padding for the odd kernel
    assert 0 < pad < L, "reflect padding requires pad < L (same constraint as PyTorch)"

    itemsize = 4
    Cp = _round_up(C, 8)
    halo = _round_up(pad, 64)           # 2*halo is a lane-aligned (multiple-of-128) block
    step = 2 * halo

    # L-tile: multiple of `step`, large enough to amortize per-step overhead, capped so
    # double-buffered blocks + window scratch stay well inside v7x's 64 MiB VMEM.
    T = max(step, (min(tile_l, _round_up(L, step)) // step) * step)
    budget = 16 * 1024 * 1024
    T = min(T, max(step, ((budget // (itemsize * Cp * 6)) // step) * step))

    nL = pl.cdiv(L, T)
    L_round = nL * T
    P = L_round + 2 * halo              # padded length streamed by the kernel

    # ---- single wrapper pass: reflect pad + halo/tail zero pad, native NCL layout ----
    xf = x_ncl.astype(jnp.float32)
    left = jnp.flip(xf[:, :, 1:pad + 1], axis=-1)            # x[pad], ..., x[1]
    right = jnp.flip(xf[:, :, L - pad - 1:L - 1], axis=-1)   # x[L-2], ..., x[L-pad-1]
    xp = jnp.concatenate(
        [jnp.zeros((B, C, halo - pad), jnp.float32), left, xf, right,
         jnp.zeros((B, C, P - (halo + L + pad)), jnp.float32)], axis=-1)   # (B, C, P)
    # TODO(synk): handle the reflect boundary inside the kernel to drop this pass.

    # Weight reshuffle (tiny, weight-sized only).
    w1_kcc = jnp.transpose(w1, (2, 0, 1)).astype(jnp.float32)   # (K, C_out, C_in)
    w2_mat = w2[:, :, 0].astype(jnp.float32)                    # (C_out, C_in)
    b1_col = b1.reshape(C, 1).astype(jnp.float32)
    b2_col = b2.reshape(C, 1).astype(jnp.float32)

    # VMEM limit derived from actual block sizes (double-buffered in/out + scratch + weights).
    resident = itemsize * Cp * (2 * T + 2 * step + 2 * T + (T + 2 * halo))
    weights = itemsize * ((KSIZE + 1) * Cp * _round_up(C, 128) + 2 * Cp * 128)
    vmem_limit = int(min(100 * 1024 * 1024,
                         max(16 * 1024 * 1024, 4 * (resident + weights))))

    kernel = functools.partial(_residual_unit_kernel,
                               halo=halo, pad=pad, dilation=dilation)

    out = pl.pallas_call(
        kernel,
        out_shape=jax.ShapeDtypeStruct((B, C, L), x_ncl.dtype),
        grid=(B, nL),
        in_specs=[
            # main lanes of the padded input: [j*T, (j+1)*T)
            pl.BlockSpec((1, C, T), lambda b, j: (b, 0, j)),
            # halo lanes of the same padded input: [(j+1)*T, (j+1)*T + 2*halo)
            pl.BlockSpec((1, C, step), lambda b, j: (b, 0, (j + 1) * (T // step))),
            pl.BlockSpec((KSIZE, C, C), lambda b, j: (0, 0, 0)),
            pl.BlockSpec((C, 1), lambda b, j: (0, 0)),
            pl.BlockSpec((C, C), lambda b, j: (0, 0)),
            pl.BlockSpec((C, 1), lambda b, j: (0, 0)),
        ],
        # Output written directly in NCL; the uneven tail block is masked by Pallas.
        out_specs=pl.BlockSpec((1, C, T), lambda b, j: (b, 0, j)),
        scratch_shapes=[pltpu.VMEM((C, T + 2 * halo), jnp.float32)],
        compiler_params=pltpu.CompilerParams(
            dimension_semantics=("parallel", "parallel"),
            vmem_limit_bytes=vmem_limit,
        ),
    )(xp, xp, w1_kcc, b1_col, w2_mat, b2_col)
    return out


def residual_unit_reference(x_ncl, w1, b1, w2, b2, dilation=1):
    """Pure-JAX f32 reference matching the PyTorch forward (for verification)."""
    pad = dilation * (KSIZE - 1) // 2
    xpad = jnp.pad(x_ncl, ((0, 0), (0, 0), (pad, pad)), mode="reflect")
    h = lax.conv_general_dilated(
        xpad, w1, window_strides=(1,), padding="VALID",
        rhs_dilation=(dilation,),
        dimension_numbers=("NCH", "OIH", "NCH")) + b1[None, :, None]
    h = jnp.where(h > 0, h, jnp.expm1(h))
    y = lax.conv_general_dilated(
        h, w2, window_strides=(1,), padding="VALID",
        dimension_numbers=("NCH", "OIH", "NCH")) + b2[None, :, None]
    return x_ncl + y


if __name__ == "__main__":
    B, C, L = 2, 4, 160

    key = jax.random.PRNGKey(0)
    kx, k1, kb1, k2, kb2 = jax.random.split(key, 5)

    x = jax.random.normal(kx, (B, C, L), dtype=jnp.float32)
    # Deterministic synthetic parameters (shapes from the module __init__).
    w1 = jax.random.normal(k1, (C, C, KSIZE), dtype=jnp.float32) * 0.1
    b1 = jax.random.normal(kb1, (C,), dtype=jnp.float32) * 0.1
    w2 = jax.random.normal(k2, (C, C, 1), dtype=jnp.float32) * 0.1
    b2 = jax.random.normal(kb2, (C,), dtype=jnp.float32) * 0.1

    tol = dict(atol=2e-2, rtol=2e-2)

    # dilation=1, multi-tile path (T=128 -> 2 L-tiles, masked tail on the last tile).
    out = jax.block_until_ready(residual_unit(x, w1, b1, w2, b2, dilation=1, tile_l=128))
    ref = residual_unit_reference(x, w1, b1, w2, b2, dilation=1)
    assert out.shape == (B, C, L)
    assert jnp.allclose(out, ref, **tol), "mismatch vs reference (dilation=1, tiled)"

    # dilation=1, single-tile path (default tile swallows the whole sequence).
    out2 = jax.block_until_ready(residual_unit(x, w1, b1, w2, b2, dilation=1))
    assert jnp.allclose(out2, ref, **tol), "mismatch vs reference (dilation=1, single tile)"

    # dilation=3 exercises the dilated taps and a wider reflect pad.
    out3 = jax.block_until_ready(residual_unit(x, w1, b1, w2, b2, dilation=3, tile_l=128))
    ref3 = residual_unit_reference(x, w1, b1, w2, b2, dilation=3)
    assert jnp.allclose(out3, ref3, **tol), "mismatch vs reference (dilation=3)"

    print("KERNEL_OK")
</pallas_src>

<mosaic_0001>
module attributes {stable_mosaic.version = 11 : i64} {
  func.func @_residual_unit_kernel(%arg0: i32, %arg1: i32, %arg2: memref<1x4x128xf32, #tpu.memory_space<vmem>>, %arg3: memref<1x4x128xf32, #tpu.memory_space<vmem>>, %arg4: memref<21x4x4xf32, #tpu.memory_space<vmem>>, %arg5: memref<4x1xf32, #tpu.memory_space<vmem>>, %arg6: memref<4x4xf32, #tpu.memory_space<vmem>>, %arg7: memref<4x1xf32, #tpu.memory_space<vmem>>, %arg8: memref<1x4x128xf32, #tpu.memory_space<vmem>>, %arg9: memref<4x256xf32, #tpu.memory_space<vmem>>) attributes {dimension_semantics = [#tpu.dimension_semantics<parallel>, #tpu.dimension_semantics<parallel>], iteration_bounds = array<i64: 2, 2>, scalar_prefetch = 0 : i64, scratch_operands = 1 : i64, tpu.core_type = #tpu.core_type<tc>, window_params = [{transform_indices = @transform_0, window_bounds = array<i64: 1, 4, 128>}, {transform_indices = @transform_1, window_bounds = array<i64: 1, 4, 128>}, {pipeline_mode = #tpu.pipeline_mode<synchronous>, transform_indices = @transform_2, window_bounds = array<i64: 21, 4, 4>}, {pipeline_mode = #tpu.pipeline_mode<synchronous>, transform_indices = @transform_3, window_bounds = array<i64: 4, 1>}, {pipeline_mode = #tpu.pipeline_mode<synchronous>, transform_indices = @transform_4, window_bounds = array<i64: 4, 4>}, {pipeline_mode = #tpu.pipeline_mode<synchronous>, transform_indices = @transform_5, window_bounds = array<i64: 4, 1>}, {transform_indices = @transform_6, window_bounds = array<i64: 1, 4, 128>}]} {
    %c0 = arith.constant 0 : index
    %c0_0 = arith.constant 0 : index
    %c0_1 = arith.constant 0 : index
    %0 = vector.load %arg2[%c0, %c0_0, %c0_1] : memref<1x4x128xf32, #tpu.memory_space<vmem>>, vector<1x4x128xf32>
    %1 = vector.shape_cast %0 : vector<1x4x128xf32> to vector<4x128xf32>
    %c0_2 = arith.constant 0 : index
    %c0_3 = arith.constant 0 : index
    %2 = vector.load %arg9[%c0_2, %c0_3] : memref<4x256xf32, #tpu.memory_space<vmem>>, vector<4x128xf32>
    tpu.vector_store %arg9[%c0_2, %c0_3], %1 {strides = array<i32>} : memref<4x256xf32, #tpu.memory_space<vmem>>, vector<4x128xf32>,
    %c0_4 = arith.constant 0 : index
    %c0_5 = arith.constant 0 : index
    %c0_6 = arith.constant 0 : index
    %3 = vector.load %arg3[%c0_4, %c0_5, %c0_6] : memref<1x4x128xf32, #tpu.memory_space<vmem>>, vector<1x4x128xf32>
    %4 = vector.shape_cast %3 : vector<1x4x128xf32> to vector<4x128xf32>
    %c0_7 = arith.constant 0 : index
    %c128 = arith.constant 128 : index
    %5 = vector.load %arg9[%c0_7, %c128] : memref<4x256xf32, #tpu.memory_space<vmem>>, vector<4x128xf32>
    tpu.vector_store %arg9[%c0_7, %c128], %4 {strides = array<i32>} : memref<4x256xf32, #tpu.memory_space<vmem>>, vector<4x128xf32>,
    %c0_8 = arith.constant 0 : index
    %c0_9 = arith.constant 0 : index
    %6 = vector.load %arg5[%c0_8, %c0_9] : memref<4x1xf32, #tpu.memory_space<vmem>>, vector<4x1xf32>
    %7 = vector.shape_cast %6 : vector<4x1xf32> to vector<4x1xf32>
    %8 = vector.broadcast %7 : vector<4x1xf32> to vector<4x128xf32>
    %c0_10 = arith.constant 0 : index
    %c0_11 = arith.constant 0 : index
    %c0_12 = arith.constant 0 : index
    %9 = vector.load %arg4[%c0_10, %c0_11, %c0_12] : memref<21x4x4xf32, #tpu.memory_space<vmem>>, vector<1x4x4xf32>
    %10 = vector.shape_cast %9 : vector<1x4x4xf32> to vector<4x4xf32>
    %c0_13 = arith.constant 0 : index
    %c54 = arith.constant 54 : index
    %11 = vector.load %arg9[%c0_13, %c54] : memref<4x256xf32, #tpu.memory_space<vmem>>, vector<4x128xf32>
    %cst = arith.constant dense<0.000000e+00> : vector<4x128xf32>
    %12 = tpu.matmul %10, %11, %cst {dimension_numbers = #tpu.dot_dimension_numbers<[1], [0], [0], [1], [0, 0, 1, 1], [], []>} : vector<4x4xf32>, vector<4x128xf32>, vector<4x128xf32> -> vector<4x128xf32>
    %13 = arith.addf %8, %12 : vector<4x128xf32>
    %c1 = arith.constant 1 : index
    %c0_14 = arith.constant 0 : index
    %c0_15 = arith.constant 0 : index
    %14 = vector.load %arg4[%c1, %c0_14, %c0_15] : memref<21x4x4xf32, #tpu.memory_space<vmem>>, vector<1x4x4xf32>
    %15 = vector.shape_cast %14 : vector<1x4x4xf32> to vector<4x4xf32>
    %c0_16 = arith.constant 0 : index
    %c55 = arith.constant 55 : index
    %16 = vector.load %arg9[%c0_16, %c55] : memref<4x256xf32, #tpu.memory_space<vmem>>, vector<4x128xf32>
    %cst_17 = arith.constant dense<0.000000e+00> : vector<4x128xf32>
    %17 = tpu.matmul %15, %16, %cst_17 {dimension_numbers = #tpu.dot_dimension_numbers<[1], [0], [0], [1], [0, 0, 1, 1], [], []>} : vector<4x4xf32>, vector<4x128xf32>, vector<4x128xf32> -> vector<4x128xf32>
    %18 = arith.addf %13, %17 : vector<4x128xf32>
    %c2 = arith.constant 2 : index
    %c0_18 = arith.constant 0 : index
    %c0_19 = arith.constant 0 : index
    %19 = vector.load %arg4[%c2, %c0_18, %c0_19] : memref<21x4x4xf32, #tpu.memory_space<vmem>>, vector<1x4x4xf32>
    %20 = vector.shape_cast %19 : vector<1x4x4xf32> to vector<4x4xf32>
    %c0_20 = arith.constant 0 : index
    %c56 = arith.constant 56 : index
    %21 = vector.load %arg9[%c0_20, %c56] : memref<4x256xf32, #tpu.memory_space<vmem>>, vector<4x128xf32>
    %cst_21 = arith.constant dense<0.000000e+00> : vector<4x128xf32>
    %22 = tpu.matmul %20, %21, %cst_21 {dimension_numbers = #tpu.dot_dimension_numbers<[1], [0], [0], [1], [0, 0, 1, 1], [], []>} : vector<4x4xf32>, vector<4x128xf32>, vector<4x128xf32> -> vector<4x128xf32>
    %23 = arith.addf %18, %22 : vector<4x128xf32>
    %c3 = arith.constant 3 : index
    %c0_22 = arith.constant 0 : index
    %c0_23 = arith.constant 0 : index
    %24 = vector.load %arg4[%c3, %c0_22, %c0_23] : memref<21x4x4xf32, #tpu.memory_space<vmem>>, vector<1x4x4xf32>
    %25 = vector.shape_cast %24 : vector<1x4x4xf32> to vector<4x4xf32>
    %c0_24 = arith.constant 0 : index
    %c57 = arith.constant 57 : index
    %26 = vector.load %arg9[%c0_24, %c57] : memref<4x256xf32, #tpu.memory_space<vmem>>, vector<4x128xf32>
    %cst_25 = arith.constant dense<0.000000e+00> : vector<4x128xf32>
    %27 = tpu.matmul %25, %26, %cst_25 {dimension_numbers = #tpu.dot_dimension_numbers<[1], [0], [0], [1], [0, 0, 1, 1], [], []>} : vector<4x4xf32>, vector<4x128xf32>, vector<4x128xf32> -> vector<4x128xf32>
    %28 = arith.addf %23, %27 : vector<4x128xf32>
    %c4 = arith.constant 4 : index
    %c0_26 = arith.constant 0 : index
    %c0_27 = arith.constant 0 : index
    %29 = vector.load %arg4[%c4, %c0_26, %c0_27] : memref<21x4x4xf32, #tpu.memory_space<vmem>>, vector<1x4x4xf32>
    %30 = vector.shape_cast %29 : vector<1x4x4xf32> to vector<4x4xf32>
    %c0_28 = arith.constant 0 : index
    %c58 = arith.constant 58 : index
    %31 = vector.load %arg9[%c0_28, %c58] : memref<4x256xf32, #tpu.memory_space<vmem>>, vector<4x128xf32>
    %cst_29 = arith.constant dense<0.000000e+00> : vector<4x128xf32>
    %32 = tpu.matmul %30, %31, %cst_29 {dimension_numbers = #tpu.dot_dimension_numbers<[1], [0], [0], [1], [0, 0, 1, 1], [], []>} : vector<4x4xf32>, vector<4x128xf32>, vector<4x128xf32> -> vector<4x128xf32>
    %33 = arith.addf %28, %32 : vector<4x128xf32>
    %c5 = arith.constant 5 : index
    %c0_30 = arith.constant 0 : index
    %c0_31 = arith.constant 0 : index
    %34 = vector.load %arg4[%c5, %c0_30, %c0_31] : memref<21x4x4xf32, #tpu.memory_space<vmem>>, vector<1x4x4xf32>
    %35 = vector.shape_cast %34 : vector<1x4x4xf32> to vector<4x4xf32>
    %c0_32 = arith.constant 0 : index
    %c59 = arith.constant 59 : index
    %36 = vector.load %arg9[%c0_32, %c59] : memref<4x256xf32, #tpu.memory_space<vmem>>, vector<4x128xf32>
    %cst_33 = arith.constant dense<0.000000e+00> : vector<4x128xf32>
    %37 = tpu.matmul %35, %36, %cst_33 {dimension_numbers = #tpu.dot_dimension_numbers<[1], [0], [0], [1], [0, 0, 1, 1], [], []>} : vector<4x4xf32>, vector<4x128xf32>, vector<4x128xf32> -> vector<4x128xf32>
    %38 = arith.addf %33, %37 : vector<4x128xf32>
    %c6 = arith.constant 6 : index
    %c0_34 = arith.constant 0 : index
    %c0_35 = arith.constant 0 : index
    %39 = vector.load %arg4[%c6, %c0_34, %c0_35] : memref<21x4x4xf32, #tpu.memory_space<vmem>>, vector<1x4x4xf32>
    %40 = vector.shape_cast %39 : vector<1x4x4xf32> to vector<4x4xf32>
    %c0_36 = arith.constant 0 : index
    %c60 = arith.constant 60 : index
    %41 = vector.load %arg9[%c0_36, %c60] : memref<4x256xf32, #tpu.memory_space<vmem>>, vector<4x128xf32>
    %cst_37 = arith.constant dense<0.000000e+00> : vector<4x128xf32>
    %42 = tpu.matmul %40, %41, %cst_37 {dimension_numbers = #tpu.dot_dimension_numbers<[1], [0], [0], [1], [0, 0, 1, 1], [], []>} : vector<4x4xf32>, vector<4x128xf32>, vector<4x128xf32> -> vector<4x128xf32>
    %43 = arith.addf %38, %42 : vector<4x128xf32>
    %c7 = arith.constant 7 : index
    %c0_38 = arith.constant 0 : index
    %c0_39 = arith.constant 0 : index
    %44 = vector.load %arg4[%c7, %c0_38, %c0_39] : memref<21x4x4xf32, #tpu.memory_space<vmem>>, vector<1x4x4xf32>
    %45 = vector.shape_cast %44 : vector<1x4x4xf32> to vector<4x4xf32>
    %c0_40 = arith.constant 0 : index
    %c61 = arith.constant 61 : index
    %46 = vector.load %arg9[%c0_40, %c61] : memref<4x256xf32, #tpu.memory_space<vmem>>, vector<4x128xf32>
    %cst_41 = arith.constant dense<0.000000e+00> : vector<4x128xf32>
    %47 = tpu.matmul %45, %46, %cst_41 {dimension_numbers = #tpu.dot_dimension_numbers<[1], [0], [0], [1], [0, 0, 1, 1], [], []>} : vector<4x4xf32>, vector<4x128xf32>, vector<4x128xf32> -> vector<4x128xf32>
    %48 = arith.addf %43, %47 : vector<4x128xf32>
    %c8 = arith.constant 8 : index
    %c0_42 = arith.constant 0 : index
    %c0_43 = arith.constant 0 : index
    %49 = vector.load %arg4[%c8, %c0_42, %c0_43] : memref<21x4x4xf32, #tpu.memory_space<vmem>>, vector<1x4x4xf32>
    %50 = vector.shape_cast %49 : vector<1x4x4xf32> to vector<4x4xf32>
    %c0_44 = arith.constant 0 : index
    %c62 = arith.constant 62 : index
    %51 = vector.load %arg9[%c0_44, %c62] : memref<4x256xf32, #tpu.memory_space<vmem>>, vector<4x128xf32>
    %cst_45 = arith.constant dense<0.000000e+00> : vector<4x128xf32>
    %52 = tpu.matmul %50, %51, %cst_45 {dimension_numbers = #tpu.dot_dimension_numbers<[1], [0], [0], [1], [0, 0, 1, 1], [], []>} : vector<4x4xf32>, vector<4x128xf32>, vector<4x128xf32> -> vector<4x128xf32>
    %53 = arith.addf %48, %52 : vector<4x128xf32>
    %c9 = arith.constant 9 : index
    %c0_46 = arith.constant 0 : index
    %c0_47 = arith.constant 0 : index
    %54 = vector.load %arg4[%c9, %c0_46, %c0_47] : memref<21x4x4xf32, #tpu.memory_space<vmem>>, vector<1x4x4xf32>
    %55 = vector.shape_cast %54 : vector<1x4x4xf32> to vector<4x4xf32>
    %c0_48 = arith.constant 0 : index
    %c63 = arith.constant 63 : index
    %56 = vector.load %arg9[%c0_48, %c63] : memref<4x256xf32, #tpu.memory_space<vmem>>, vector<4x128xf32>
    %cst_49 = arith.constant dense<0.000000e+00> : vector<4x128xf32>
    %57 = tpu.matmul %55, %56, %cst_49 {dimension_numbers = #tpu.dot_dimension_numbers<[1], [0], [0], [1], [0, 0, 1, 1], [], []>} : vector<4x4xf32>, vector<4x128xf32>, vector<4x128xf32> -> vector<4x128xf32>
    %58 = arith.addf %53, %57 : vector<4x128xf32>
    %c10 = arith.constant 10 : index
    %c0_50 = arith.constant 0 : index
    %c0_51 = arith.constant 0 : index
    %59 = vector.load %arg4[%c10, %c0_50, %c0_51] : memref<21x4x4xf32, #tpu.memory_space<vmem>>, vector<1x4x4xf32>
    %60 = vector.shape_cast %59 : vector<1x4x4xf32> to vector<4x4xf32>
    %c0_52 = arith.constant 0 : index
    %c64 = arith.constant 64 : index
    %61 = vector.load %arg9[%c0_52, %c64] : memref<4x256xf32, #tpu.memory_space<vmem>>, vector<4x128xf32>
    %cst_53 = arith.constant dense<0.000000e+00> : vector<4x128xf32>
    %62 = tpu.matmul %60, %61, %cst_53 {dimension_numbers = #tpu.dot_dimension_numbers<[1], [0], [0], [1], [0, 0, 1, 1], [], []>} : vector<4x4xf32>, vector<4x128xf32>, vector<4x128xf32> -> vector<4x128xf32>
    %63 = arith.addf %58, %62 : vector<4x128xf32>
    %c11 = arith.constant 11 : index
    %c0_54 = arith.constant 0 : index
    %c0_55 = arith.constant 0 : index
    %64 = vector.load %arg4[%c11, %c0_54, %c0_55] : memref<21x4x4xf32, #tpu.memory_space<vmem>>, vector<1x4x4xf32>
    %65 = vector.shape_cast %64 : vector<1x4x4xf32> to vector<4x4xf32>
    %c0_56 = arith.constant 0 : index
    %c65 = arith.constant 65 : index
    %66 = vector.load %arg9[%c0_56, %c65] : memref<4x256xf32, #tpu.memory_space<vmem>>, vector<4x128xf32>
    %cst_57 = arith.constant dense<0.000000e+00> : vector<4x128xf32>
    %67 = tpu.matmul %65, %66, %cst_57 {dimension_numbers = #tpu.dot_dimension_numbers<[1], [0], [0], [1], [0, 0, 1, 1], [], []>} : vector<4x4xf32>, vector<4x128xf32>, vector<4x128xf32> -> vector<4x128xf32>
    %68 = arith.addf %63, %67 : vector<4x128xf32>
    %c12 = arith.constant 12 : index
    %c0_58 = arith.constant 0 : index
    %c0_59 = arith.constant 0 : index
    %69 = vector.load %arg4[%c12, %c0_58, %c0_59] : memref<21x4x4xf32, #tpu.memory_space<vmem>>, vector<1x4x4xf32>
    %70 = vector.shape_cast %69 : vector<1x4x4xf32> to vector<4x4xf32>
    %c0_60 = arith.constant 0 : index
    %c66 = arith.constant 66 : index
    %71 = vector.load %arg9[%c0_60, %c66] : memref<4x256xf32, #tpu.memory_space<vmem>>, vector<4x128xf32>
    %cst_61 = arith.constant dense<0.000000e+00> : vector<4x128xf32>
    %72 = tpu.matmul %70, %71, %cst_61 {dimension_numbers = #tpu.dot_dimension_numbers<[1], [0], [0], [1], [0, 0, 1, 1], [], []>} : vector<4x4xf32>, vector<4x128xf32>, vector<4x128xf32> -> vector<4x128xf32>
    %73 = arith.addf %68, %72 : vector<4x128xf32>
    %c13 = arith.constant 13 : index
    %c0_62 = arith.constant 0 : index
    %c0_63 = arith.constant 0 : index
    %74 = vector.load %arg4[%c13, %c0_62, %c0_63] : memref<21x4x4xf32, #tpu.memory_space<vmem>>, vector<1x4x4xf32>
    %75 = vector.shape_cast %74 : vector<1x4x4xf32> to vector<4x4xf32>
    %c0_64 = arith.constant 0 : index
    %c67 = arith.constant 67 : index
    %76 = vector.load %arg9[%c0_64, %c67] : memref<4x256xf32, #tpu.memory_space<vmem>>, vector<4x128xf32>
    %cst_65 = arith.constant dense<0.000000e+00> : vector<4x128xf32>
    %77 = tpu.matmul %75, %76, %cst_65 {dimension_numbers = #tpu.dot_dimension_numbers<[1], [0], [0], [1], [0, 0, 1, 1], [], []>} : vector<4x4xf32>, vector<4x128xf32>, vector<4x128xf32> -> vector<4x128xf32>
    %78 = arith.addf %73, %77 : vector<4x128xf32>
    %c14 = arith.constant 14 : index
    %c0_66 = arith.constant 0 : index
    %c0_67 = arith.constant 0 : index
    %79 = vector.load %arg4[%c14, %c0_66, %c0_67] : memref<21x4x4xf32, #tpu.memory_space<vmem>>, vector<1x4x4xf32>
    %80 = vector.shape_cast %79 : vector<1x4x4xf32> to vector<4x4xf32>
    %c0_68 = arith.constant 0 : index
    %c68 = arith.constant 68 : index
    %81 = vector.load %arg9[%c0_68, %c68] : memref<4x256xf32, #tpu.memory_space<vmem>>, vector<4x128xf32>
    %cst_69 = arith.constant dense<0.000000e+00> : vector<4x128xf32>
    %82 = tpu.matmul %80, %81, %cst_69 {dimension_numbers = #tpu.dot_dimension_numbers<[1], [0], [0], [1], [0, 0, 1, 1], [], []>} : vector<4x4xf32>, vector<4x128xf32>, vector<4x128xf32> -> vector<4x128xf32>
    %83 = arith.addf %78, %82 : vector<4x128xf32>
    %c15 = arith.constant 15 : index
    %c0_70 = arith.constant 0 : index
    %c0_71 = arith.constant 0 : index
    %84 = vector.load %arg4[%c15, %c0_70, %c0_71] : memref<21x4x4xf32, #tpu.memory_space<vmem>>, vector<1x4x4xf32>
    %85 = vector.shape_cast %84 : vector<1x4x4xf32> to vector<4x4xf32>
    %c0_72 = arith.constant 0 : index
    %c69 = arith.constant 69 : index
    %86 = vector.load %arg9[%c0_72, %c69] : memref<4x256xf32, #tpu.memory_space<vmem>>, vector<4x128xf32>
    %cst_73 = arith.constant dense<0.000000e+00> : vector<4x128xf32>
    %87 = tpu.matmul %85, %86, %cst_73 {dimension_numbers = #tpu.dot_dimension_numbers<[1], [0], [0], [1], [0, 0, 1, 1], [], []>} : vector<4x4xf32>, vector<4x128xf32>, vector<4x128xf32> -> vector<4x128xf32>
    %88 = arith.addf %83, %87 : vector<4x128xf32>
    %c16 = arith.constant 16 : index
    %c0_74 = arith.constant 0 : index
    %c0_75 = arith.constant 0 : index
    %89 = vector.load %arg4[%c16, %c0_74, %c0_75] : memref<21x4x4xf32, #tpu.memory_space<vmem>>, vector<1x4x4xf32>
    %90 = vector.shape_cast %89 : vector<1x4x4xf32> to vector<4x4xf32>
    %c0_76 = arith.constant 0 : index
    %c70 = arith.constant 70 : index
    %91 = vector.load %arg9[%c0_76, %c70] : memref<4x256xf32, #tpu.memory_space<vmem>>, vector<4x128xf32>
    %cst_77 = arith.constant dense<0.000000e+00> : vector<4x128xf32>
    %92 = tpu.matmul %90, %91, %cst_77 {dimension_numbers = #tpu.dot_dimension_numbers<[1], [0], [0], [1], [0, 0, 1, 1], [], []>} : vector<4x4xf32>, vector<4x128xf32>, vector<4x128xf32> -> vector<4x128xf32>
    %93 = arith.addf %88, %92 : vector<4x128xf32>
    %c17 = arith.constant 17 : index
    %c0_78 = arith.constant 0 : index
    %c0_79 = arith.constant 0 : index
    %94 = vector.load %arg4[%c17, %c0_78, %c0_79] : memref<21x4x4xf32, #tpu.memory_space<vmem>>, vector<1x4x4xf32>
    %95 = vector.shape_cast %94 : vector<1x4x4xf32> to vector<4x4xf32>
    %c0_80 = arith.constant 0 : index
    %c71 = arith.constant 71 : index
    %96 = vector.load %arg9[%c0_80, %c71] : memref<4x256xf32, #tpu.memory_space<vmem>>, vector<4x128xf32>
    %cst_81 = arith.constant dense<0.000000e+00> : vector<4x128xf32>
    %97 = tpu.matmul %95, %96, %cst_81 {dimension_numbers = #tpu.dot_dimension_numbers<[1], [0], [0], [1], [0, 0, 1, 1], [], []>} : vector<4x4xf32>, vector<4x128xf32>, vector<4x128xf32> -> vector<4x128xf32>
    %98 = arith.addf %93, %97 : vector<4x128xf32>
    %c18 = arith.constant 18 : index
    %c0_82 = arith.constant 0 : index
    %c0_83 = arith.constant 0 : index
    %99 = vector.load %arg4[%c18, %c0_82, %c0_83] : memref<21x4x4xf32, #tpu.memory_space<vmem>>, vector<1x4x4xf32>
    %100 = vector.shape_cast %99 : vector<1x4x4xf32> to vector<4x4xf32>
    %c0_84 = arith.constant 0 : index
    %c72 = arith.constant 72 : index
    %101 = vector.load %arg9[%c0_84, %c72] : memref<4x256xf32, #tpu.memory_space<vmem>>, vector<4x128xf32>
    %cst_85 = arith.constant dense<0.000000e+00> : vector<4x128xf32>
    %102 = tpu.matmul %100, %101, %cst_85 {dimension_numbers = #tpu.dot_dimension_numbers<[1], [0], [0], [1], [0, 0, 1, 1], [], []>} : vector<4x4xf32>, vector<4x128xf32>, vector<4x128xf32> -> vector<4x128xf32>
    %103 = arith.addf %98, %102 : vector<4x128xf32>
    %c19 = arith.constant 19 : index
    %c0_86 = arith.constant 0 : index
    %c0_87 = arith.constant 0 : index
    %104 = vector.load %arg4[%c19, %c0_86, %c0_87] : memref<21x4x4xf32, #tpu.memory_space<vmem>>, vector<1x4x4xf32>
    %105 = vector.shape_cast %104 : vector<1x4x4xf32> to vector<4x4xf32>
    %c0_88 = arith.constant 0 : index
    %c73 = arith.constant 73 : index
    %106 = vector.load %arg9[%c0_88, %c73] : memref<4x256xf32, #tpu.memory_space<vmem>>, vector<4x128xf32>
    %cst_89 = arith.constant dense<0.000000e+00> : vector<4x128xf32>
    %107 = tpu.matmul %105, %106, %cst_89 {dimension_numbers = #tpu.dot_dimension_numbers<[1], [0], [0], [1], [0, 0, 1, 1], [], []>} : vector<4x4xf32>, vector<4x128xf32>, vector<4x128xf32> -> vector<4x128xf32>
    %108 = arith.addf %103, %107 : vector<4x128xf32>
    %c20 = arith.constant 20 : index
    %c0_90 = arith.constant 0 : index
    %c0_91 = arith.constant 0 : index
    %109 = vector.load %arg4[%c20, %c0_90, %c0_91] : memref<21x4x4xf32, #tpu.memory_space<vmem>>, vector<1x4x4xf32>
    %110 = vector.shape_cast %109 : vector<1x4x4xf32> to vector<4x4xf32>
    %c0_92 = arith.constant 0 : index
    %c74 = arith.constant 74 : index
    %111 = vector.load %arg9[%c0_92, %c74] : memref<4x256xf32, #tpu.memory_space<vmem>>, vector<4x128xf32>
    %cst_93 = arith.constant dense<0.000000e+00> : vector<4x128xf32>
    %112 = tpu.matmul %110, %111, %cst_93 {dimension_numbers = #tpu.dot_dimension_numbers<[1], [0], [0], [1], [0, 0, 1, 1], [], []>} : vector<4x4xf32>, vector<4x128xf32>, vector<4x128xf32> -> vector<4x128xf32>
    %113 = arith.addf %108, %112 : vector<4x128xf32>
    %cst_94 = arith.constant 0.000000e+00 : f32
    %114 = vector.broadcast %cst_94 : f32 to vector<4x128xf32>
    %115 = arith.cmpf ogt, %113, %114 : vector<4x128xf32>
    %cst_95 = arith.constant 0.000000e+00 : f32
    %116 = vector.broadcast %cst_95 : f32 to vector<4x128xf32>
    %117 = arith.minimumf %113, %116 : vector<4x128xf32>
    %118 = math.exp %117 : vector<4x128xf32>
    %cst_96 = arith.constant 1.000000e+00 : f32
    %119 = vector.broadcast %cst_96 : f32 to vector<4x128xf32>
    %120 = arith.subf %118, %119 : vector<4x128xf32>
    %121 = arith.select %115, %113, %120 : vector<4x128xi1>, vector<4x128xf32>
    %c0_97 = arith.constant 0 : index
    %c0_98 = arith.constant 0 : index
    %122 = vector.load %arg6[%c0_97, %c0_98] : memref<4x4xf32, #tpu.memory_space<vmem>>, vector<4x4xf32>
    %cst_99 = arith.constant dense<0.000000e+00> : vector<4x128xf32>
    %123 = tpu.matmul %122, %121, %cst_99 {dimension_numbers = #tpu.dot_dimension_numbers<[1], [0], [0], [1], [0, 0, 1, 1], [], []>} : vector<4x4xf32>, vector<4x128xf32>, vector<4x128xf32> -> vector<4x128xf32>
    %c0_100 = arith.constant 0 : index
    %c0_101 = arith.constant 0 : index
    %124 = vector.load %arg7[%c0_100, %c0_101] : memref<4x1xf32, #tpu.memory_space<vmem>>, vector<4x1xf32>
    %125 = vector.shape_cast %124 : vector<4x1xf32> to vector<4x1xf32>
    %126 = vector.broadcast %125 : vector<4x1xf32> to vector<4x128xf32>
    %127 = arith.addf %123, %126 : vector<4x128xf32>
    %c0_102 = arith.constant 0 : index
    %c64_103 = arith.constant 64 : index
    %128 = vector.load %arg9[%c0_102, %c64_103] : memref<4x256xf32, #tpu.memory_space<vmem>>, vector<4x128xf32>
    %129 = arith.addf %128, %127 : vector<4x128xf32>
    %c0_104 = arith.constant 0 : index
    %c0_105 = arith.constant 0 : index
    %c0_106 = arith.constant 0 : index
    %130 = vector.load %arg8[%c0_104, %c0_105, %c0_106] : memref<1x4x128xf32, #tpu.memory_space<vmem>>, vector<1x4x128xf32>
    %131 = vector.shape_cast %130 : vector<1x4x128xf32> to vector<4x128xf32>
    %132 = vector.shape_cast %129 : vector<4x128xf32> to vector<1x4x128xf32>
    tpu.vector_store %arg8[%c0_104, %c0_105, %c0_106], %132 {strides = array<i32>} : memref<1x4x128xf32, #tpu.memory_space<vmem>>, vector<1x4x128xf32>,
    return
  }
  func.func @transform_0(%arg0: i32, %arg1: i32) -> (i32, i32, i32) {
    %c0_i32 = arith.constant 0 : i32
    %c0_i32_0 = arith.constant 0 : i32
    return %arg0, %c0_i32, %arg1 : i32, i32, i32
  }
  func.func @transform_1(%arg0: i32, %arg1: i32) -> (i32, i32, i32) {
    %c1_i32 = arith.constant 1 : i32
    %0 = arith.addi %arg1, %c1_i32 : i32
    %c1_i32_0 = arith.constant 1 : i32
    %1 = arith.muli %0, %c1_i32_0 : i32
    %c0_i32 = arith.constant 0 : i32
    %c0_i32_1 = arith.constant 0 : i32
    return %arg0, %c0_i32, %1 : i32, i32, i32
  }
  func.func @transform_2(%arg0: i32, %arg1: i32) -> (i32, i32, i32) {
    %c0_i32 = arith.constant 0 : i32
    %c0_i32_0 = arith.constant 0 : i32
    %c0_i32_1 = arith.constant 0 : i32
    %c0_i32_2 = arith.constant 0 : i32
    return %c0_i32, %c0_i32_0, %c0_i32_1 : i32, i32, i32
  }
  func.func @transform_3(%arg0: i32, %arg1: i32) -> (i32, i32) {
    %c0_i32 = arith.constant 0 : i32
    %c0_i32_0 = arith.constant 0 : i32
    %c0_i32_1 = arith.constant 0 : i32
    return %c0_i32, %c0_i32_0 : i32, i32
  }
  func.func @transform_4(%arg0: i32, %arg1: i32) -> (i32, i32) {
    %c0_i32 = arith.constant 0 : i32
    %c0_i32_0 = arith.constant 0 : i32
    %c0_i32_1 = arith.constant 0 : i32
    return %c0_i32, %c0_i32_0 : i32, i32
  }
  func.func @transform_5(%arg0: i32, %arg1: i32) -> (i32, i32) {
    %c0_i32 = arith.constant 0 : i32
    %c0_i32_0 = arith.constant 0 : i32
    %c0_i32_1 = arith.constant 0 : i32
    return %c0_i32, %c0_i32_0 : i32, i32
  }
  func.func @transform_6(%arg0: i32, %arg1: i32) -> (i32, i32, i32) {
    %c0_i32 = arith.constant 0 : i32
    %c0_i32_0 = arith.constant 0 : i32
    return %arg0, %c0_i32, %arg1 : i32, i32, i32
  }
}

</mosaic_0001>

<bundles_post_ra>
// kernel: tpu_custom_call.1
= control target key start
LH: loop header
LB: loop body
LE: loop exit
PB: predicated region body
PF: predicated region fallthrough
CT: control target
= control target key end

     0   :  { %11 = vsyncpa [#allocation4], 0  ;;  %s3254_s0 = inlined_call_operand.vmem [shape: f32[2,4,384], index: 0, kind: input, shape index: {}]   ;;  %s3255_s1 = inlined_call_operand.vmem [shape: f32[2,4,384], index: 1, kind: input, shape index: {}]   ;;  %s3256_s2 = inlined_call_operand.vmem [shape: f32[21,4,4], index: 2, kind: input, shape index: {}]   ;;  %s3257_s3 = inlined_call_operand.vmem [shape: f32[4,1], index: 3, kind: input, shape index: {}]   ;;  %s3258_s4 = inlined_call_operand.vmem [shape: f32[4,4], index: 4, kind: input, shape index: {}]   ;;  %s3259_s5 = inlined_call_operand.vmem [shape: f32[4,1], index: 5, kind: input, shape index: {}]   ;;  %s3260_s6 = inlined_call_operand.hbm [shape: f32[2,4,160], index: 6, kind: output, shape index: {}]  }
   0x1   :  { %13 = vsyncpa [#allocation4 + $0x1], 0  ;;  %s2897_s21 = smov 0   ;;  %s2899_s22 = smov 0  }
   0x2   :  { %s2901_s23 = smov 0   ;;  %s2903_s24 = smov 0  }
   0x3   :  { %s2905_s25 = smov 0   ;;  %s2907_s26 = smov 0  }
   0x4   :  { %s2909_s27 = smov 0   ;;  %s2911_s28 = smov 0  }
   0x5 LB: > { %3264 = sst [smem:[#allocation6_spill]] %s2831_s27  ;;  %s2368_s29 = sadd.s32 4294967295, %s2835_s28   ;;  %s2835_s28 = sphi %s2911_s28, %s19_s28   ;;  %s2831_s27 = sphi %s2909_s27, %s3271_s27   ;;  %s2827_s26 = sphi %s2907_s26, %s3276_s26   ;;  %s2823_s25 = sphi %s2905_s25, %s3269_s25   ;;  %s2819_s24 = sphi %s2903_s24, %s3275_s24   ;;  %s2815_s23 = sphi %s2901_s23, %s3274_s23   ;;  %s2811_s22 = sphi %s2899_s22, %s3273_s22   ;;  %s2807_s21 = sphi %s2897_s21, %s3272_s21  }
   0x6   : > { %s2369_s30 = sadd.s32 4294967294, %s2835_s28   ;;  %s28_s7 = sadd.s32 1, %s2827_s26 }
   0x7   : > { %p29_p0 = scmp.ge.s32.totalorder %s28_s7, 2  ;;  %s31_s8 = sadd.s32 1, %s2831_s27 }
   0x8   : > { %p192_p1 = scmp.ne.s32.totalorder %s2815_s23, %s2811_s22  ;;  %p193_p2 = scmp.eq.s32.totalorder %s2368_s29, 3 }
   0x9   : > { %s3278_s7 = smov (%p29_p0, %s28_s7), 0  ;;  %s3280_s8 = smov (!%p29_p0, %s31_s8), %s2831_s27 }
   0xa   : > { %3265 = sst [smem:[#allocation7_spill]] %s3278_s7  ;;  %s178_s9 = ssub.s32 %s2827_s26, %s3278_s7 }
   0xb   : > { %p2948_p3 = por %p193_p2, %p192_p1  ;;  %p33_p4 = scmp.ge.s32.totalorder %s3280_s8, 2 }
   0xc   : > { %p198_p5 = scmp.ne.s32.totalorder %s2811_s22, %s2807_s21  ;;  %p199_p6 = scmp.eq.s32.totalorder %s2369_s30, 3 }
   0xd   : > { %p2372_p7 = scmp.ge.s32.totalorder %s2835_s28, 1  ;;  %s3282_s8 = smov (%p33_p4, %s3280_s8), 0 }
   0xe   : > { %3267 = sst [smem:[#allocation8_spill]] %s3282_s8  ;;  %p2957_p8 = por %p199_p6, %p198_p5 }
   0xf   : > { %p253_p9 = scmp.lt.s32.totalorder %s2835_s28, 5  ;;  %s177_s12 = ssub.s32 %s2831_s27, %s3282_s8 }
  0x10   : > { %s182_s13 = sadd.s32 1, %s2815_s23  ;;  %s179_s14 = sor.u32 %s178_s9, %s177_s12 }
  0x11   : > { %p254_p10 = pnand %p2372_p7, %p253_p9  ;;  %p180_p11 = scmp.eq.s32.totalorder %s179_s14, 0 }
  0x12   : > { %p295_p12 = scmp.lt.s32.totalorder (!%p254_p10), %s2823_s25, 1  ;;  %p297_p13 = scmp.lt.s32.totalorder (!%p254_p10), %s2819_s24, 2  ;;  %v2837_v2 = vmov (!%p254_p10), 0.0   ;;  %vm2838_vm0 = vmmov (!%p254_p10), 0   ;;  %v2858_v5 = vmov (!%p254_p10), 0   ;;  %vm331_vm1 = vcmask (!%p254_p10), 605184  }
  0x13   : > { %s2966_s15 = scalar_select %p180_p11, %s2815_s23, %s182_s13  }
  0x14   : > { %257 = sbr.rel (%p254_p10) target bundleno = 944 (0x3b0), region = 44  ;;  %s303_s16 = sadd.s32 (!%p254_p10), 1, %s2819_s24  ;;  %2490 = vmatprep.subr.mxu1 (!%p254_p10), %v2837_v2  ;;  %2540 = vmatprep.subr.mxu0 (!%p254_p10), %v2837_v2  ;;  %v317_v6 = vld [vmem:[%s3257_s3] sm:$0xf] (!%p254_p10)  ;;  %vm1203_vm2 = vcmask (!%p254_p10), 523264   ;;  %vm337_vm3 = vcmask (!%p254_p10), 1043456  }
  0x15   : > { %p306_p0 = scmp.lt.s32.totalorder (!%p254_p10), %s303_s16, 2  ;;  %2492 = vmatprep.mubr.msk.f32.mxu1 (!%p254_p10), %vm2838_vm0, %v2837_v2  ;;  %2542 = vmatprep.mubr.msk.f32.mxu0 (!%p254_p10), %vm2838_vm0, %v2837_v2  ;;  %s2841_s7 = smov (!%p254_p10), 63   ;;  %v323_v11 = vld [vmem:[%s3256_s2] sm:$0xf] (!%p254_p10)  ;;  %vm333_vm4 = vcmask (!%p254_p10), 31744   ;;  %vm1290_vm5 = vcmask (!%p254_p10), 515072  }
  0x16   : > { %s2842_s8 = smov (!%p254_p10), 73   ;;  %s2848_s30 = smov (!%p254_p10), 70   ;;  %2736 = vset.pattern.permute.xlu0 (!%p254_p10), %v2858_v5  ;;  %2737 = vset.pattern.permute.xlu1 (!%p254_p10), %v2858_v5  ;;  %v2405_v12 = vld [vmem:[%s3256_s2 + $0x28] sm:$0xf] (!%p254_p10)  ;;  %vm420_vm6 = vcmask (!%p254_p10), 596992   ;;  %vm1377_vm7 = vcmask (!%p254_p10), 506880  }
  0x17   : > { %s2849_s9 = smov (!%p254_p10), 59   ;;  %v2378_v20 = vld [vmem:[%s3256_s2 + $0x4] sm:$0xf] (!%p254_p10)  ;;  %v2408_v21 = vld [vmem:[%s3256_s2 + $0x2c] sm:$0xf] (!%p254_p10)  ;;  %vm507_vm8 = vcmask (!%p254_p10), 588800  }
  0x18   : > { %v2381_v28 = vld [vmem:[%s3256_s2 + $0x8] sm:$0xf] (!%p254_p10)  ;;  %v2411_v29 = vld [vmem:[%s3256_s2 + $0x30] sm:$0xf] (!%p254_p10)  ;;  %vm1464_vm9 = vcmask (!%p254_p10), 498688   ;;  %vm594_vm10 = vcmask (!%p254_p10), 580608  }
  0x19   : > { %v2384_v36 = vld [vmem:[%s3256_s2 + $0xc] sm:$0xf] (!%p254_p10)  ;;  %v2414_v37 = vld [vmem:[%s3256_s2 + $0x34] sm:$0xf] (!%p254_p10)  ;;  %vm1551_vm11 = vcmask (!%p254_p10), 490496   ;;  %vm681_vm12 = vcmask (!%p254_p10), 572416  }
  0x1a   : > { %v2387_v44 = vld [vmem:[%s3256_s2 + $0x10] sm:$0xf] (!%p254_p10)  ;;  %v2417_v45 = vld [vmem:[%s3256_s2 + $0x38] sm:$0xf] (!%p254_p10)  ;;  %vm1638_vm13 = vcmask (!%p254_p10), 482304   ;;  %vm768_vm14 = vcmask (!%p254_p10), 564224  }
  0x1b   : > { %s296_s17 = scalar_select %p295_p12, %s2823_s25, 1  ;;  %v2390_v52 = vld [vmem:[%s3256_s2 + $0x14] sm:$0xf]  ;;  %v2420_v53 = vld [vmem:[%s3256_s2 + $0x3c] sm:$0xf]  ;;  %vm1725_vm15 = vcmask 474112  }
  0x1c   : > { %s298_s18 = scalar_select %p297_p13, %s2819_s24, 2  ;;  %v2393_v60 = vld [vmem:[%s3256_s2 + $0x18] sm:$0xf]  ;;  %v2423_v61 = vld [vmem:[%s3256_s2 + $0x40] sm:$0xf] }
  0x1d   : > { %s2640_s19 = smul.u32 3, %s296_s17  ;;  %s3284_s16 = smov (!%p306_p0, %s303_s16), 2 }
  0x1e   : > { %s2843_s17 = smov 62  }
  0x1f   : > { %s300_s20 = sadd.s32 %s2640_s19, %s298_s18  ;;  %s309_s13 = sadd.s32 %s2640_s19, %s3284_s16 }
  0x20   : > { %s2374_s29 = sshll.u32 %s300_s20, 2  ;;  %s2375_s14 = sshll.u32 %s309_s13, 2 }
  0x21   : > { %s302_s12 = scalar_lea.vmem %s3254_s0, %s2374_s29  ;;  %s311_s27 = scalar_lea.vmem %s3255_s1, %s2375_s14 }
  0x22   : > { %v313_v0 = vld [vmem:[%s302_s12] sm:$0xf]  ;;  %s2839_s16 = smov 64   ;;  %s2844_s18 = smov 72  }
  0x23   : > { %314 = vst [vmem:[#allocation2] sm:$0xf] %v313_v0  ;;  %v315_v1 = vld [vmem:[%s311_s27] sm:$0xf]  ;;  %s2840_s27 = smov 74   ;;  %s2845_s19 = smov 61  }
  0x24   : > { %316 = vst [vmem:[#allocation2 + $0x4] sm:$0xf] %v315_v1  ;;  %s2846_s20 = smov 71   ;;  %s2847_s29 = smov 60  }
  0x25   : > { %s2850_s12 = smov 69   ;;  %s2851_s13 = smov 58  }
  0x26   : > { %s2852_s14 = smov 68  }
  0x2b   : > { %v2985_v3 = vld [vmem:[#allocation2] sm:$0xff] }
  0x2c   : > { %1199 = vrot.lane.b32.xlu0 %v2985_v3, %s2839_s16  ;;  %327 = vrot.lane.b32.xlu1 %v2985_v3, %s2840_s27  ;;  %v326_v4 = vcombine.high %v2985_v3, %v2985_v3 }
  0x30   : > { %1201 = vrot.lane.b32.xlu0 %v326_v4, %s2839_s16  ;;  %329 = vrot.lane.b32.xlu1 %v326_v4, %s2840_s27  ;;  %s2853_s27 = smov 57  }
  0x34   : > { %1286 = vrot.lane.b32.xlu0 %v2985_v3, %s2841_s7  ;;  %1288 = vrot.lane.b32.xlu1 %v326_v4, %s2841_s7  ;;  %s2854_s7 = smov 67  }
  0x38   : > { %416 = vrot.lane.b32.xlu0 %v2985_v3, %s2842_s8  ;;  %418 = vrot.lane.b32.xlu1 %v326_v4, %s2842_s8  ;;  %s2855_s8 = smov 56  }
  0x3c   : > { %1373 = vrot.lane.b32.xlu0 %v2985_v3, %s2843_s17  ;;  %1375 = vrot.lane.b32.xlu1 %v326_v4, %s2843_s17  ;;  %s2856_s17 = smov 66  }
  0x40   : > { %503 = vrot.lane.b32.xlu0 %v2985_v3, %s2844_s18  ;;  %505 = vrot.lane.b32.xlu1 %v326_v4, %s2844_s18  ;;  %s2857_s18 = smov 55  }
  0x44   : > { %1460 = vrot.lane.b32.xlu0 %v2985_v3, %s2845_s19  ;;  %1462 = vrot.lane.b32.xlu1 %v326_v4, %s2845_s19  ;;  %s2859_s19 = smov 65  }
  0x48   : > { %590 = vrot.lane.b32.xlu0 %v2985_v3, %s2846_s20  ;;  %592 = vrot.lane.b32.xlu1 %v326_v4, %s2846_s20  ;;  %s2860_s20 = smov 54  }
  0x4c   : > { %1547 = vrot.lane.b32.xlu0 %v2985_v3, %s2847_s29  ;;  %1549 = vrot.lane.b32.xlu1 %v326_v4, %s2847_s29 }
  0x50   : > { %677 = vrot.lane.b32.xlu0 %v2985_v3, %s2848_s30  ;;  %679 = vrot.lane.b32.xlu1 %v326_v4, %s2848_s30 }
  0x54   : > { %1634 = vrot.lane.b32.xlu0 %v2985_v3, %s2849_s9  ;;  %1636 = vrot.lane.b32.xlu1 %v326_v4, %s2849_s9 }
  0x58   : > { %764 = vrot.lane.b32.xlu0 %v2985_v3, %s2850_s12  ;;  %766 = vrot.lane.b32.xlu1 %v326_v4, %s2850_s12 }
  0x5c   : > { %1721 = vrot.lane.b32.xlu0 %v2985_v3, %s2851_s13  ;;  %1723 = vrot.lane.b32.xlu1 %v326_v4, %s2851_s13 }
  0x60   : > { %851 = vrot.lane.b32.xlu0 %v2985_v3, %s2852_s14  ;;  %853 = vrot.lane.b32.xlu1 %v326_v4, %s2852_s14 }
  0x64   : > { %1808 = vrot.lane.b32.xlu0 %v2985_v3, %s2853_s27  ;;  %1810 = vrot.lane.b32.xlu1 %v326_v4, %s2853_s27 }
  0x68   : > { %938 = vrot.lane.b32.xlu0 %v2985_v3, %s2854_s7  ;;  %940 = vrot.lane.b32.xlu1 %v326_v4, %s2854_s7 }
  0x6c   : > { %1895 = vrot.lane.b32.xlu0 %v2985_v3, %s2855_s8  ;;  %1897 = vrot.lane.b32.xlu1 %v326_v4, %s2855_s8 }
  0x70   : > { %1025 = vrot.lane.b32.xlu0 %v2985_v3, %s2856_s17  ;;  %1027 = vrot.lane.b32.xlu1 %v326_v4, %s2856_s17  ;;  %s292_s17 = sand.u32 1, %s2811_s22  }
  0x74   : > { %1982 = vrot.lane.b32.xlu0 %v2985_v3, %s2857_s18  ;;  %1984 = vrot.lane.b32.xlu1 %v326_v4, %s2857_s18  ;;  %s2373_s18 = sshll.u32 %s292_s17, 2 }
  0x75   : > { %s294_s30 = scalar_lea.vmem [#allocation3], %s2373_s18 }
  0x76   : > { %s2272_s9 = sshll.u32 %s294_s30, 4  ;;  %s3202_s9 = int_to_ptr.vmem [resolvable:$true] %s2272_s9 }
  0x78   : > { %1112 = vrot.lane.b32.xlu0 %v2985_v3, %s2859_s19  ;;  %1114 = vrot.lane.b32.xlu1 %v326_v4, %s2859_s19  ;;  %s2442_s19 = sshll.u32 %s2823_s25, 1  ;;  %s2257_s25 = scalar_lea.sflag [#allocation4], %s292_s17 }
  0x7c   : > { %2069 = vrot.lane.b32.xlu0 %v2985_v3, %s2860_s20  ;;  %2071 = vrot.lane.b32.xlu1 %v326_v4, %s2860_s20  ;;  %s2268_s20 = sadd.s32 %s2819_s24, %s2442_s19  ;;  %s2741_s24 = scalar_lea.vmem %s3202_s9, 64 }
  0x7d   : > { %s2443_s29 = sshll.u32 %s2268_s20, 6  ;;  %p2742_p1 = scmp.ne.s32.totalorder %s3202_s9, %s2741_s24 }
  0x7e   : > { %s3200_s14 = scalar_lea.hbm %s3260_s6, %s2443_s29 }
  0x7f   : > { %p2743_p2 = pnand %p2742_p1, %p2948_p3 }
  0x80   : > { %320 = vperm.xlu0 %2736, %v317_v6   ;;  %v2396_v6 = vld [vmem:[%s3256_s2 + $0x1c] sm:$0xf] }
  0x81   : > { %p2744_p4 = pneg %p2743_p2 }
  0x9e   : > { %v1200_v7 = vpop.permute.xlu0 %1199  ;;  %v328_v8 = vpop.permute.xlu1 %327 }
  0xa2   : > { %v1202_v9 = vpop.permute.xlu0 %1201  ;;  %v330_v10 = vpop.permute.xlu1 %329 }
  0xa3   : > { %v332_v13 = vsel %vm331_vm1, %v328_v8, %v330_v10  ;;  %v1204_v14 = vsel %vm1203_vm2, %v1200_v7, %v1202_v9  ;;  %vm855_vm1 = vcmask 556032   ;;  %v2426_v7 = vld [vmem:[%s3256_s2 + $0x44] sm:$0xf] }
  0xa4   : > { %2491 = vmatpush3.msk.msra.mxu1 %vm337_vm3, %v332_v13  ;;  %2541 = vmatpush3.msk.msra.mxu0 %vm337_vm3, %v1204_v14  ;;  %v2399_v14 = vld [vmem:[%s3256_s2 + $0x20] sm:$0xf] }
  0xa5   : > { %2493 = vmatmul.mubr.msk.f32.vlgmr.msra.gmra.mrb[0].mxu1 %vm333_vm4, %v323_v11  ;;  %2543 = vmatmul.mubr.msk.f32.vlgmr.msra.gmra.mrb[0].mxu0 %vm333_vm4, %v2405_v12 }
  0xa6   : > { %v1287_v15 = vpop.permute.xlu0 %1286  ;;  %v1289_v16 = vpop.permute.xlu1 %1288  ;;  %2545 = vmatprep.subr.mxu0 %v2837_v2  ;;  %2495 = vmatprep.subr.mxu1 %v2837_v2 }
  0xa7   : > { %v1291_v17 = vsel %vm1290_vm5, %v1287_v15, %v1289_v16  ;;  %2497 = vmatprep.mubr.msk.f32.mxu1 %vm2838_vm0, %v2837_v2  ;;  %2547 = vmatprep.mubr.msk.f32.mxu0 %vm2838_vm0, %v2837_v2  ;;  %vm1812_vm5 = vcmask 465920   ;;  %v2429_v15 = vld [vmem:[%s3256_s2 + $0x48] sm:$0xf] }
  0xa8   : > { %2546 = vmatpush3.msk.msra.mxu0 %vm337_vm3, %v1291_v17 }
  0xa9   : > { %2550 = vmatprep.subr.mxu0 %v2837_v2 }
  0xaa   : > { %v417_v18 = vpop.permute.xlu0 %416  ;;  %v419_v19 = vpop.permute.xlu1 %418 }
  0xab   : > { %v421_v22 = vsel %vm420_vm6, %v417_v18, %v419_v19  ;;  %vm942_vm6 = vcmask 547840  }
  0xac   : > { %2496 = vmatpush3.msk.msra.mxu1 %vm337_vm3, %v421_v22  ;;  %v2402_v22 = vld [vmem:[%s3256_s2 + $0x24] sm:$0xf] }
  0xad   : > { %2498 = vmatmul.mubr.msk.f32.vlgmr.msra.gmra.mrb[0].mxu1 %vm333_vm4, %v2378_v20  ;;  %2548 = vmatmul.mubr.msk.f32.vlgmr.msra.gmra.mrb[0].mxu0 %vm333_vm4, %v2408_v21 }
  0xae   : > { %v1374_v23 = vpop.permute.xlu0 %1373  ;;  %v1376_v24 = vpop.permute.xlu1 %1375  ;;  %2500 = vmatprep.subr.mxu1 %v2837_v2  ;;  %2502 = vmatprep.mubr.msk.f32.mxu1 %vm2838_vm0, %v2837_v2 }
  0xaf   : > { %v1378_v25 = vsel %vm1377_vm7, %v1374_v23, %v1376_v24  ;;  %2552 = vmatprep.mubr.msk.f32.mxu0 %vm2838_vm0, %v2837_v2  ;;  %vm1899_vm7 = vcmask 457728   ;;  %v2432_v23 = vld [vmem:[%s3256_s2 + $0x4c] sm:$0xf] }
  0xb0   : > { %2551 = vmatpush3.msk.msra.mxu0 %vm337_vm3, %v1378_v25 }
  0xb1   : > { %2555 = vmatprep.subr.mxu0 %v2837_v2 }
  0xb2   : > { %v504_v26 = vpop.permute.xlu0 %503  ;;  %v506_v27 = vpop.permute.xlu1 %505 }
  0xb3   : > { %v508_v30 = vsel %vm507_vm8, %v504_v26, %v506_v27  ;;  %vm1029_vm8 = vcmask 539648  }
  0xb4   : > { %2501 = vmatpush3.msk.msra.mxu1 %vm337_vm3, %v508_v30 }
  0xb5   : > { %2503 = vmatmul.mubr.msk.f32.vlgmr.msra.gmra.mrb[0].mxu1 %vm333_vm4, %v2381_v28  ;;  %2553 = vmatmul.mubr.msk.f32.vlgmr.msra.gmra.mrb[0].mxu0 %vm333_vm4, %v2411_v29  ;;  %v2435_v28 = vld [vmem:[%s3256_s2 + $0x50] sm:$0xf]  ;;  %v2158_v29 = vld [vmem:[%s3259_s5] sm:$0xf] }
  0xb6   : > { %v1461_v31 = vpop.permute.xlu0 %1460  ;;  %v1463_v32 = vpop.permute.xlu1 %1462  ;;  %2505 = vmatprep.subr.mxu1 %v2837_v2  ;;  %2507 = vmatprep.mubr.msk.f32.mxu1 %vm2838_vm0, %v2837_v2 }
  0xb7   : > { %v1465_v33 = vsel %vm1464_vm9, %v1461_v31, %v1463_v32  ;;  %2557 = vmatprep.mubr.msk.f32.mxu0 %vm2838_vm0, %v2837_v2  ;;  %vm1986_vm9 = vcmask 449536   ;;  %2161 = vperm.xlu1 %2737, %v2158_v29  }
  0xb8   : > { %2556 = vmatpush3.msk.msra.mxu0 %vm337_vm3, %v1465_v33 }
  0xb9   : > { %2560 = vmatprep.subr.mxu0 %v2837_v2 }
  0xba   : > { %v591_v34 = vpop.permute.xlu0 %590  ;;  %v593_v35 = vpop.permute.xlu1 %592 }
  0xbb   : > { %v595_v38 = vsel %vm594_vm10, %v591_v34, %v593_v35  ;;  %vm1116_vm10 = vcmask 531456  }
  0xbc   : > { %2506 = vmatpush3.msk.msra.mxu1 %vm337_vm3, %v595_v38 }
  0xbd   : > { %2508 = vmatmul.mubr.msk.f32.vlgmr.msra.gmra.mrb[0].mxu1 %vm333_vm4, %v2384_v36  ;;  %2558 = vmatmul.mubr.msk.f32.vlgmr.msra.gmra.mrb[0].mxu0 %vm333_vm4, %v2414_v37 }
  0xbe   : > { %v1548_v39 = vpop.permute.xlu0 %1547  ;;  %v1550_v40 = vpop.permute.xlu1 %1549  ;;  %2510 = vmatprep.subr.mxu1 %v2837_v2  ;;  %2512 = vmatprep.mubr.msk.f32.mxu1 %vm2838_vm0, %v2837_v2 }
  0xbf   : > { %v1552_v41 = vsel %vm1551_vm11, %v1548_v39, %v1550_v40  ;;  %2562 = vmatprep.mubr.msk.f32.mxu0 %vm2838_vm0, %v2837_v2  ;;  %vm2073_vm11 = vcmask 441344   ;;  %v2157_v40 = vld [vmem:[%s3258_s4] sm:$0xf] }
  0xc0   : > { %2561 = vmatpush3.msk.msra.mxu0 %vm337_vm3, %v1552_v41 }
  0xc1   : > { %2565 = vmatprep.subr.mxu0 %v2837_v2 }
  0xc2   : > { %v678_v42 = vpop.permute.xlu0 %677  ;;  %v680_v43 = vpop.permute.xlu1 %679 }
  0xc3   : > { %v682_v46 = vsel %vm681_vm12, %v678_v42, %v680_v43 }
  0xc4   : > { %2511 = vmatpush3.msk.msra.mxu1 %vm337_vm3, %v682_v46 }
  0xc5   : > { %2513 = vmatmul.mubr.msk.f32.vlgmr.msra.gmra.mrb[0].mxu1 %vm333_vm4, %v2387_v44  ;;  %2563 = vmatmul.mubr.msk.f32.vlgmr.msra.gmra.mrb[0].mxu0 %vm333_vm4, %v2417_v45 }
  0xc6   : > { %v1635_v47 = vpop.permute.xlu0 %1634  ;;  %v1637_v48 = vpop.permute.xlu1 %1636  ;;  %2515 = vmatprep.subr.mxu1 %v2837_v2  ;;  %2517 = vmatprep.mubr.msk.f32.mxu1 %vm2838_vm0, %v2837_v2 }
  0xc7   : > { %v1639_v49 = vsel %vm1638_vm13, %v1635_v47, %v1637_v48  ;;  %2567 = vmatprep.mubr.msk.f32.mxu0 %vm2838_vm0, %v2837_v2 }
  0xc8   : > { %2566 = vmatpush3.msk.msra.mxu0 %vm337_vm3, %v1639_v49 }
  0xc9   : > { %2570 = vmatprep.subr.mxu0 %v2837_v2 }
  0xca   : > { %v765_v50 = vpop.permute.xlu0 %764  ;;  %v767_v51 = vpop.permute.xlu1 %766 }
  0xcb   : > { %v769_v54 = vsel %vm768_vm14, %v765_v50, %v767_v51 }
  0xcc   : > { %2516 = vmatpush3.msk.msra.mxu1 %vm337_vm3, %v769_v54 }
  0xcd   : > { %2518 = vmatmul.mubr.msk.f32.vlgmr.msra.gmra.mrb[0].mxu1 %vm333_vm4, %v2390_v52  ;;  %2568 = vmatmul.mubr.msk.f32.vlgmr.msra.gmra.mrb[0].mxu0 %vm333_vm4, %v2420_v53 }
  0xce   : > { %v1722_v55 = vpop.permute.xlu0 %1721  ;;  %v1724_v56 = vpop.permute.xlu1 %1723  ;;  %2520 = vmatprep.subr.mxu1 %v2837_v2  ;;  %2522 = vmatprep.mubr.msk.f32.mxu1 %vm2838_vm0, %v2837_v2 }
  0xcf   : > { %v1726_v57 = vsel %vm1725_vm15, %v1722_v55, %v1724_v56  ;;  %2572 = vmatprep.mubr.msk.f32.mxu0 %vm2838_vm0, %v2837_v2 }
  0xd0   : > { %2571 = vmatpush3.msk.msra.mxu0 %vm337_vm3, %v1726_v57 }
  0xd1   : > { %2575 = vmatprep.subr.mxu0 %v2837_v2 }
  0xd2   : > { %v852_v58 = vpop.permute.xlu0 %851  ;;  %v854_v59 = vpop.permute.xlu1 %853 }
  0xd3   : > { %v856_v62 = vsel %vm855_vm1, %v852_v58, %v854_v59 }
  0xd4   : > { %2521 = vmatpush3.msk.msra.mxu1 %vm337_vm3, %v856_v62 }
  0xd5   : > { %2523 = vmatmul.mubr.msk.f32.vlgmr.msra.gmra.mrb[0].mxu1 %vm333_vm4, %v2393_v60  ;;  %2573 = vmatmul.mubr.msk.f32.vlgmr.msra.gmra.mrb[0].mxu0 %vm333_vm4, %v2423_v61 }
  0xd6   : > { %v1809_v63 = vpop.permute.xlu0 %1808  ;;  %v1811_v0 = vpop.permute.xlu1 %1810  ;;  %2525 = vmatprep.subr.mxu1 %v2837_v2  ;;  %2527 = vmatprep.mubr.msk.f32.mxu1 %vm2838_vm0, %v2837_v2 }
  0xd7   : > { %v1813_v1 = vsel %vm1812_vm5, %v1809_v63, %v1811_v0  ;;  %2577 = vmatprep.mubr.msk.f32.mxu0 %vm2838_vm0, %v2837_v2 }
  0xd8   : > { %2576 = vmatpush3.msk.msra.mxu0 %vm337_vm3, %v1813_v1 }
  0xd9   : > { %2580 = vmatprep.subr.mxu0 %v2837_v2 }
  0xda   : > { %v939_v4 = vpop.permute.xlu0 %938  ;;  %v941_v5 = vpop.permute.xlu1 %940 }
  0xdb   : > { %v943_v8 = vsel %vm942_vm6, %v939_v4, %v941_v5 }
  0xdc   : > { %2526 = vmatpush3.msk.msra.mxu1 %vm337_vm3, %v943_v8 }
  0xdd   : > { %2528 = vmatmul.mubr.msk.f32.vlgmr.msra.gmra.mrb[0].mxu1 %vm333_vm4, %v2396_v6  ;;  %2578 = vmatmul.mubr.msk.f32.vlgmr.msra.gmra.mrb[0].mxu0 %vm333_vm4, %v2426_v7 }
  0xde   : > { %v1896_v9 = vpop.permute.xlu0 %1895  ;;  %v1898_v10 = vpop.permute.xlu1 %1897  ;;  %2530 = vmatprep.subr.mxu1 %v2837_v2  ;;  %2532 = vmatprep.mubr.msk.f32.mxu1 %vm2838_vm0, %v2837_v2 }
  0xdf   : > { %v1900_v11 = vsel %vm1899_vm7, %v1896_v9, %v1898_v10  ;;  %2582 = vmatprep.mubr.msk.f32.mxu0 %vm2838_vm0, %v2837_v2 }
  0xe0   : > { %2581 = vmatpush3.msk.msra.mxu0 %vm337_vm3, %v1900_v11 }
  0xe1   : > { %2585 = vmatprep.subr.mxu0 %v2837_v2 }
  0xe2   : > { %v1026_v12 = vpop.permute.xlu0 %1025  ;;  %v1028_v13 = vpop.permute.xlu1 %1027 }
  0xe3   : > { %v1030_v16 = vsel %vm1029_vm8, %v1026_v12, %v1028_v13 }
  0xe4   : > { %2531 = vmatpush3.msk.msra.mxu1 %vm337_vm3, %v1030_v16 }
  0xe5   : > { %2533 = vmatmul.mubr.msk.f32.vlgmr.msra.gmra.mrb[0].mxu1 %vm333_vm4, %v2399_v14  ;;  %2583 = vmatmul.mubr.msk.f32.vlgmr.msra.gmra.mrb[0].mxu0 %vm333_vm4, %v2429_v15 }
  0xe6   : > { %v1983_v17 = vpop.permute.xlu0 %1982  ;;  %v1985_v18 = vpop.permute.xlu1 %1984  ;;  %2535 = vmatprep.subr.mxu1 %v2837_v2  ;;  %2537 = vmatprep.mubr.msk.f32.mxu1 %vm2838_vm0, %v2837_v2 }
  0xe7   : > { %v1987_v19 = vsel %vm1986_vm9, %v1983_v17, %v1985_v18  ;;  %2587 = vmatprep.mubr.msk.f32.mxu0 %vm2838_vm0, %v2837_v2 }
  0xe8   : > { %2586 = vmatpush3.msk.msra.mxu0 %vm337_vm3, %v1987_v19 }
  0xe9   : > { %2590 = vmatprep.subr.mxu0 %v2837_v2 }
  0xea   : > { %v1113_v20 = vpop.permute.xlu0 %1112  ;;  %v1115_v21 = vpop.permute.xlu1 %1114 }
  0xeb   : > { %v1117_v24 = vsel %vm1116_vm10, %v1113_v20, %v1115_v21 }
  0xec   : > { %2536 = vmatpush3.msk.msra.mxu1 %vm337_vm3, %v1117_v24 }
  0xed   : > { %2538 = vmatmul.mubr.msk.f32.vlgmr.msra.gmra.mrb[0].mxu1 %vm333_vm4, %v2402_v22  ;;  %2588 = vmatmul.mubr.msk.f32.vlgmr.msra.gmra.mrb[0].mxu0 %vm333_vm4, %v2432_v23 }
  0xee   : > { %v2070_v25 = vpop.permute.xlu0 %2069  ;;  %v2072_v26 = vpop.permute.xlu1 %2071  ;;  %2592 = vmatprep.mubr.msk.f32.mxu0 %vm2838_vm0, %v2837_v2  ;;  %2595 = vmatprep.subr.mxu1 %v2837_v2 }
  0xef   : > { %v2074_v27 = vsel %vm2073_vm11, %v2070_v25, %v2072_v26  ;;  %2597 = vmatprep.mubr.msk.f32.mxu1 %vm2838_vm0, %v2837_v2 }
  0xf0   : > { %2591 = vmatpush3.msk.msra.mxu0 %vm337_vm3, %v2074_v27 }
  0xf5   : > { %2593 = vmatmul.mubr.msk.f32.vlgmr.msra.gmra.mrb[0].mxu0 %vm333_vm4, %v2435_v28 }
  0xff   : > { %v321_v32 = vpop.permute.xlu0 %320 }
 0x136   : > { %v2162_v42 = vpop.permute.xlu1 %2161 }
 0x1c0   : > { %v1189_v30 = vpop.f32.mrb[0].mxu1 }
 0x1c1   : > { %v2539_v31 = vpop.f32.mrb[1].mxu1  ;;  %v2600_v33 = vadd.f32 %v1189_v30, %v321_v32 }
 0x1c8   : > { %v2146_v34 = vpop.f32.mrb[0].mxu0 }
 0x1c9   : > { %v2601_v35 = vadd.f32 %v2600_v33, %v2146_v34  ;;  %v2594_v2 = vpop.f32.mrb[1].mxu0 }
 0x1cb   : > { %v2152_v36 = vmin.f32 %v2601_v35, 0.0  ;;  %vm2151_vm0 = vcmp.gt.f32.partialorder %v2601_v35, 0.0 }
 0x1cd   : > { %v2153_v37 = vmul.f32 1.442695, %v2152_v36 }
 0x1cf   : > { %2739 = vpow2.f32 %v2153_v37 }
 0x1d9   : > { %v2740_v38 = vpop.eup %2739 }
 0x1da   : > { %v2438_v39 = vadd.f32 -1.0, %v2740_v38 }
 0x1dc   : > { %v2156_v41 = vsel %vm2151_vm0, %v2601_v35, %v2438_v39 }
 0x1dd   : > { %2596 = vmatpush3.msk.msra.mxu1 %vm337_vm3, %v2156_v41 }
 0x1de   : > { %2598 = vmatmul.mubr.msk.f32.vlgmr.msra.gmra.mrb[2].mxu1 %vm333_vm4, %v2157_v40 }
 0x2b1   : > { %v2236_v43 = vpop.f32.mrb[2].mxu1 }
 0x2b2   : > { %v2237_v44 = vadd.f32 %v2236_v43, %v2162_v42  ;;  %v2599_v45 = vpop.f32.mrb[3].mxu1 }
 0x2b4   : > { %2241 = vrot.lane.b32.xlu1 %v2237_v44, %s2839_s16 }
 0x326   : > { %v2242_v46 = vpop.permute.xlu1 %2241 }
 0x327   : > { %v2243_v47 = vrot.slane %v2242_v46, 4 }
 0x329   : > { %v2244_v48 = vsel %vm1203_vm2, %v2243_v47, %v2242_v46 }
 0x32a   : > { %v2246_v49 = vadd.f32 %v2244_v48, %v2985_v3 }
 0x32c   : > { %2249 = vrot.lane.b32.xlu0 %v2246_v49, %s2839_s16  ;;  %v2248_v50 = vcombine.high %v2246_v49, %v2246_v49 }
 0x32e   : > { %2251 = vrot.lane.b32.xlu1 %v2248_v50, %s2839_s16  ;;  %s2861_s16 = smov [#allocation3]  }
 0x32f   : > { %s2745_s27 = sshll.u32 %s2861_s16, 4  ;;  %s2746_s27 = int_to_ptr.vmem [resolvable:$false] %s2745_s27 }
 0x330   : > { %s2747_s7 = scalar_lea.vmem %s2746_s27, 128  ;;  %p2748_p5 = scmp.lt.s32.totalorder %s3202_s9, %s2746_s27 }
 0x331   : > { %p2749_p6 = scmp.lt.s32.totalorder %s2747_s7, %s2741_s24 }
 0x333   : > { %p2750_p7 = por %p2749_p6, %p2748_p5 }
 0x335   : > { %p2751_p9 = pnand %p2750_p7, %p2744_p4 }
 0x39e   : > { %v2250_v51 = vpop.permute.xlu0 %2249 }
 0x3a0   : > { %v2252_v52 = vpop.permute.xlu1 %2251 }
 0x3a1   : > { %v2253_v3 = vsel %vm1203_vm2, %v2250_v51, %v2252_v52 }
 0x3a2   : > { %2255 = vst [vmem:[%s294_s30] sm:$0xf] %v2253_v3 }
 0x3a3   : > { %2754 = shalt.err (!%p2751_p9)
}
 0x3a4   : > { %s2755_s8 = scalar_lea.hbm %s3200_s14, 64  ;;  %s2759_s19 = scalar_lea.hbm %s3260_s6, 256 }
 0x3a5   : > { %p2756_p10 = scmp.ne.s32.totalorder %s3200_s14, %s2755_s8  ;;  %p2760_p13 = scmp.lt.u32.totalorder %s3200_s14, %s3260_s6 }
 0x3a6   : > { %p2761_p0 = scmp.lt.u32.totalorder %s2759_s19, %s2755_s8  ;;  %p2763_p2 = scmp.lt.u32.totalorder %s2755_s8, %s3200_s14 }
 0x3a7   : > { %p2757_p11 = pnand %p2756_p10, %p2948_p3 }
 0x3a8   : > { %p2762_p1 = por %p2761_p0, %p2760_p13 }
 0x3a9   : > { %p2758_p12 = pneg %p2757_p11 }
 0x3aa   : > { %p2764_p4 = por %p2763_p2, %p2762_p1 }
 0x3ac   : > { %p2765_p5 = pnand %p2764_p4, %p2758_p12 }
 0x3ae   : > { %2768 = shalt.err (!%p2765_p5)
}
 0x3af   : > { %2641 = dma.vmem_to_hbm [thread:$0]  (%p2948_p3), %s3202_s9, 64, %s3200_s14, %s2257_s25  }
 0x3b0 PF: > { %p2647_p6 = scmp.ge.s32.totalorder %s2835_s28, 2  ;;  %s2284_s30 = sand.u32 1, %s2807_s21  }
 0x3b1   : > { %s2285_s12 = scalar_lea.sflag [#allocation4], %s2284_s30 }
 0x3b2   : > { %p2644_p7 = pnand %p2647_p6, %p2957_p8 }
 0x3b4   : > { %2802 = dma.done.wait (!%p2644_p7), %s2285_s12, 64  }
 0x3b5   : > { %2804 = vsyncadd (!%p2644_p7), %s2285_s12, 4294967232  ;;  %s19_s28 = sadd.s32 1, %s2835_s28   ;;  %s3269_s25 = sld [smem:[#allocation6_spill]] }
 0x3b6   : > { %p16_p9 = scmp.ge.s32.totalorder %s19_s28, 6   ;;  %s3270_s10 = sld [smem:[#allocation7_spill]] }
 0x3b7   : > { %s3271_s27 = sld [smem:[#allocation8_spill]]  ;;  %s3272_s21 = smov %s2811_s22 }
 0x3b8   : > { %s3273_s22 = smov %s2815_s23  ;;  %s3274_s23 = smov %s2966_s15 }
 0x3b9   : > { %s3275_s24 = smov %s2827_s26  ;;  %18 = sbr.rel (!%p16_p9) target bundleno = 5 (0x5), region = 102 }
 0x3bc   : > { %s3276_s26 = smov %s3270_s10 }
 0x3c0   :  { %2290 = vsyncpa [#allocation4], 1 }
 0x3c1   :  { %2292 = vsyncpa [#allocation4 + $0x1], 1 }

</bundles_post_ra>
